<compile_context>
chip_gen: v6e
topology: v6e:2x2x1
jax: 0.10.0
libtpu: 0.0.40
codegen_flags: <defaults>
</compile_context>

<pallas_src>
import functools

import jax
import jax.numpy as jnp
from jax.experimental import pallas as pl
from jax.experimental.pallas import tpu as pltpu


def _round_up(x, m):
    return ((x + m - 1) // m) * m


def _pick_tk(kp):
    # kp is a multiple of 128; use the largest K tile <= 512 that divides kp.
    for cand in (512, 256, 128):
        if kp % cand == 0:
            return cand
    return 128


def classifier_kernel(z_ref, w_ref, b_ref, o_ref, acc_ref):
    k = pl.program_id(2)

    @pl.when(k == 0)
    def _init():
        acc_ref[...] = jnp.zeros_like(acc_ref)

    # bf16 x bf16 -> f32 accumulate on the MXU.
    acc_ref[...] += jnp.dot(z_ref[...], w_ref[...],
                            preferred_element_type=jnp.float32)

    @pl.when(k == pl.num_programs(2) - 1)
    def _finalize():
        # Bias add in f32, single cast to the output dtype.
        o_ref[...] = (acc_ref[...] + b_ref[...]).astype(o_ref.dtype)


def prepare_classifier_params(weight, bias):
    """One-time parameter prep (analog of nn.Linear init).

    weight: (num_class, hidden)  -- PyTorch layout
    bias:   (num_class,)
    Returns:
      w_prep: (Kp, Np) bfloat16  -- transposed + zero-padded to 128 multiples
      b_prep: (1, Np)  float32   -- zero-padded, kept in f32 for accurate add
    """
    num_class, hidden = weight.shape
    kp = _round_up(hidden, 128)
    np_ = _round_up(num_class, 128)
    w_t = jnp.asarray(weight).T.astype(jnp.bfloat16)          # (hidden, num_class)
    w_prep = jnp.pad(w_t, ((0, kp - hidden), (0, np_ - num_class)))
    b_prep = jnp.pad(jnp.asarray(bias, jnp.float32),
                     (0, np_ - num_class)).reshape(1, np_)
    return w_prep, b_prep


@functools.partial(jax.jit, static_argnames=("num_class",))
def classifier_forward(z, w_prep, b_prep, num_class):
    """Pallas equivalent of nn.Linear(hidden_dim, num_class).forward.

    z:       (..., hidden)     any float dtype (cast to bf16 for the MXU)
    w_prep:  (Kp, Np) bf16     from prepare_classifier_params
    b_prep:  (1, Np)  f32      from prepare_classifier_params
    returns  (..., num_class)  in z.dtype
    """
    lead_shape = z.shape[:-1]
    hidden = z.shape[-1]
    z2d = z.reshape(-1, hidden)
    batch = z2d.shape[0]
    kp, np_ = w_prep.shape
    out_dtype = z.dtype

    # Tile sizes.
    tn = 128
    tk = _pick_tk(kp)
    tm = 128 if batch > 128 else _round_up(max(batch, 1), 8)
    mp = _round_up(batch, tm)

    # Pad activations to the tiled shape (zero rows / zero K-cols contribute 0).
    z_pad = jnp.pad(z2d.astype(jnp.bfloat16),
                    ((0, mp - batch), (0, kp - hidden)))

    out_padded = pl.pallas_call(
        classifier_kernel,
        out_shape=jax.ShapeDtypeStruct((mp, np_), out_dtype),
        grid=(mp // tm, np_ // tn, kp // tk),
        in_specs=[
            pl.BlockSpec((tm, tk), lambda i, j, k: (i, k)),   # z tile
            pl.BlockSpec((tk, tn), lambda i, j, k: (k, j)),   # W^T tile
            pl.BlockSpec((1, tn), lambda i, j, k: (0, j)),    # bias follows N tile
        ],
        out_specs=pl.BlockSpec((tm, tn), lambda i, j, k: (i, j)),
        scratch_shapes=[pltpu.VMEM((tm, tn), jnp.float32)],
        compiler_params=pltpu.CompilerParams(
            dimension_semantics=("parallel", "parallel", "arbitrary")),
    )(z_pad, w_prep, b_prep)

    out = out_padded[:batch, :num_class]
    return out.reshape(lead_shape + (num_class,))


if __name__ == "__main__":
    # Small shapes implied by the module's forward: z is (batch, hidden_dim).
    batch, hidden_dim, num_class = 8, 32, 10

    key = jax.random.PRNGKey(0)
    kz, kw, kb = jax.random.split(key, 3)

    # Deterministic init mimicking nn.Linear default (uniform +-1/sqrt(fan_in)).
    bound = 1.0 / (hidden_dim ** 0.5)
    weight = jax.random.uniform(kw, (num_class, hidden_dim), jnp.float32,
                                minval=-bound, maxval=bound)
    bias = jax.random.uniform(kb, (num_class,), jnp.float32,
                              minval=-bound, maxval=bound)
    z = jax.random.normal(kz, (batch, hidden_dim), jnp.float32)

    # One-time parameter preparation (would live in module init).
    w_prep, b_prep = prepare_classifier_params(weight, bias)

    out = classifier_forward(z, w_prep, b_prep, num_class)
    out = jax.block_until_ready(out)
    assert out.shape == (batch, num_class), out.shape

    # Reference in matching precision (bf16 operands, f32 accumulate + bias).
    ref_bf16 = jnp.dot(z.astype(jnp.bfloat16), weight.astype(jnp.bfloat16).T,
                       preferred_element_type=jnp.float32) + bias
    assert jnp.allclose(out, ref_bf16, atol=1e-5, rtol=1e-5)

    # Loose check vs full-f32 math confirms the Linear semantics are preserved.
    ref_f32 = z @ weight.T + bias
    assert jnp.allclose(out, ref_f32, atol=2e-2, rtol=2e-2)

    print("KERNEL_OK")
</pallas_src>

<mosaic_0001>
module attributes {stable_mosaic.version = 11 : i64} {
  func.func @classifier_kernel(%arg0: i32, %arg1: i32, %arg2: i32, %arg3: memref<8x128xbf16, #tpu.memory_space<vmem>>, %arg4: memref<128x128xbf16, #tpu.memory_space<vmem>>, %arg5: memref<1x128xf32, #tpu.memory_space<vmem>>, %arg6: memref<8x128xf32, #tpu.memory_space<vmem>>, %arg7: memref<8x128xf32, #tpu.memory_space<vmem>>) attributes {dimension_semantics = [#tpu.dimension_semantics<parallel>, #tpu.dimension_semantics<parallel>, #tpu.dimension_semantics<arbitrary>], iteration_bounds = array<i64: 1, 1, 1>, scalar_prefetch = 0 : i64, scratch_operands = 1 : i64, tpu.core_type = #tpu.core_type<tc>, window_params = [{transform_indices = @transform_0, window_bounds = array<i64: 8, 128>}, {transform_indices = @transform_1, window_bounds = array<i64: 128, 128>}, {transform_indices = @transform_2, window_bounds = array<i64: 1, 128>}, {transform_indices = @transform_3, window_bounds = array<i64: 8, 128>}]} {
    %c0_i32 = arith.constant 0 : i32
    %0 = arith.cmpi eq, %arg2, %c0_i32 : i32
    %1 = arith.extui %0 : i1 to i32
    %c0_i32_0 = arith.constant 0 : i32
    %2 = arith.cmpi ne, %1, %c0_i32_0 : i32
    scf.if %2 {
      %cst_10 = arith.constant 0.000000e+00 : f32
      %12 = vector.broadcast %cst_10 : f32 to vector<8x128xf32>
      %c0_11 = arith.constant 0 : index
      %c0_12 = arith.constant 0 : index
      %13 = vector.load %arg7[%c0_11, %c0_12] : memref<8x128xf32, #tpu.memory_space<vmem>>, vector<8x128xf32>
      tpu.vector_store %arg7[%c0_11, %c0_12], %12 {strides = array<i32>} : memref<8x128xf32, #tpu.memory_space<vmem>>, vector<8x128xf32>,
    } else {
    }
    %c0 = arith.constant 0 : index
    %c0_1 = arith.constant 0 : index
    %3 = vector.load %arg7[%c0, %c0_1] : memref<8x128xf32, #tpu.memory_space<vmem>>, vector<8x128xf32>
    %c0_2 = arith.constant 0 : index
    %c0_3 = arith.constant 0 : index
    %4 = vector.load %arg3[%c0_2, %c0_3] : memref<8x128xbf16, #tpu.memory_space<vmem>>, vector<8x128xbf16>
    %c0_4 = arith.constant 0 : index
    %c0_5 = arith.constant 0 : index
    %5 = vector.load %arg4[%c0_4, %c0_5] : memref<128x128xbf16, #tpu.memory_space<vmem>>, vector<128x128xbf16>
    %cst = arith.constant dense<0.000000e+00> : vector<8x128xf32>
    %6 = tpu.matmul %4, %5, %cst {dimension_numbers = #tpu.dot_dimension_numbers<[1], [0], [0], [1], [0, 0, 1, 1], [], []>} : vector<8x128xbf16>, vector<128x128xbf16>, vector<8x128xf32> -> vector<8x128xf32>
    %7 = arith.addf %3, %6 : vector<8x128xf32>
    %c0_6 = arith.constant 0 : index
    %c0_7 = arith.constant 0 : index
    %8 = vector.load %arg7[%c0_6, %c0_7] : memref<8x128xf32, #tpu.memory_space<vmem>>, vector<8x128xf32>
    tpu.vector_store %arg7[%c0_6, %c0_7], %7 {strides = array<i32>} : memref<8x128xf32, #tpu.memory_space<vmem>>, vector<8x128xf32>,
    %c0_i32_8 = arith.constant 0 : i32
    %9 = arith.cmpi eq, %arg2, %c0_i32_8 : i32
    %10 = arith.extui %9 : i1 to i32
    %c0_i32_9 = arith.constant 0 : i32
    %11 = arith.cmpi ne, %10, %c0_i32_9 : i32
    scf.if %11 {
      %c0_10 = arith.constant 0 : index
      %c0_11 = arith.constant 0 : index
      %12 = vector.load %arg7[%c0_10, %c0_11] : memref<8x128xf32, #tpu.memory_space<vmem>>, vector<8x128xf32>
      %c0_12 = arith.constant 0 : index
      %c0_13 = arith.constant 0 : index
      %13 = vector.load %arg5[%c0_12, %c0_13] : memref<1x128xf32, #tpu.memory_space<vmem>>, vector<1x128xf32>
      %14 = vector.broadcast %13 : vector<1x128xf32> to vector<8x128xf32>
      %15 = arith.addf %12, %14 : vector<8x128xf32>
      %c0_14 = arith.constant 0 : index
      %c0_15 = arith.constant 0 : index
      %16 = vector.load %arg6[%c0_14, %c0_15] : memref<8x128xf32, #tpu.memory_space<vmem>>, vector<8x128xf32>
      tpu.vector_store %arg6[%c0_14, %c0_15], %15 {strides = array<i32>} : memref<8x128xf32, #tpu.memory_space<vmem>>, vector<8x128xf32>,
    } else {
    }
    return
  }
  func.func @transform_0(%arg0: i32, %arg1: i32, %arg2: i32) -> (i32, i32) {
    %c0_i32 = arith.constant 0 : i32
    return %arg0, %arg2 : i32, i32
  }
  func.func @transform_1(%arg0: i32, %arg1: i32, %arg2: i32) -> (i32, i32) {
    %c0_i32 = arith.constant 0 : i32
    return %arg2, %arg1 : i32, i32
  }
  func.func @transform_2(%arg0: i32, %arg1: i32, %arg2: i32) -> (i32, i32) {
    %c0_i32 = arith.constant 0 : i32
    %c0_i32_0 = arith.constant 0 : i32
    return %c0_i32, %arg1 : i32, i32
  }
  func.func @transform_3(%arg0: i32, %arg1: i32, %arg2: i32) -> (i32, i32) {
    %c0_i32 = arith.constant 0 : i32
    return %arg0, %arg1 : i32, i32
  }
}

</mosaic_0001>

<bundles_post_ra>
// kernel: classifier_forward.1
= control target key start
LH: loop header
LB: loop body
LE: loop exit
PB: predicated region body
PF: predicated region fallthrough
CT: control target
= control target key end

     0   :  { %8 = vsyncpa [#allocation4], 0  ;;  %s305_s0 = inlined_call_operand.vmem [shape: bf16[8,128], index: 0, kind: input, shape index: {}]   ;;  %s306_s1 = inlined_call_operand.hbm [shape: bf16[128,128], index: 1, kind: input, shape index: {}]   ;;  %s307_s2 = inlined_call_operand.vmem [shape: f32[1,128], index: 2, kind: input, shape index: {}]   ;;  %s308_s3 = inlined_call_operand.hbm [shape: f32[8,128], index: 3, kind: output, shape index: {}]  }
   0x1   :  { %9 = vsyncpa [#allocation5], 0  ;;  %s267_s12 = smov [#allocation3]  }
   0x2   :  { %s17_s13 = sshll.u32 %s267_s12, 4  ;;  %s18_s13 = int_to_ptr.vmem [resolvable:$true] %s17_s13 }
   0x3   :  { %s231_s14 = scalar_lea.vmem %s18_s13, 1024  ;;  %p236_p1 = scmp.lt.s32.totalorder %s18_s13, %s18_s13 }
   0x4   :  { %p232_p0 = scmp.ne.s32.totalorder %s18_s13, %s231_s14  ;;  %p237_p2 = scmp.lt.s32.totalorder %s231_s14, %s231_s14 }
   0x6   :  { %p238_p3 = por %p237_p2, %p236_p1 }
   0x8   :  { %p239_p4 = pnand %p238_p3, %p232_p0 }
   0xa   :  { %242 = shalt.err (!%p239_p4)
}
   0xb   :  { %s268_s15 = smov 64   ;;  %s269_s16 = smov 4  }
   0xc   :  { %23 = dma.hbm_to_vmem [thread:$0]  %s306_s1, 1024, %s18_s13, [#allocation4], %s268_s15, %s268_s15, %s269_s16  }
   0xd   :  { %263 = dma.done.wait [#allocation4], 1024  }
   0xe   :  { %264 = vsyncadd [#allocation4], 4294966272  ;;  %v270_v0 = vmov 0.0   ;;  %vm271_vm0 = vmmov 0   ;;  %v215_v1 = vld [vmem:[#allocation3 + $0x38] sm:$0xff]   ;;  %v216_v2 = vld [vmem:[#allocation3 + $0x30] sm:$0xff]  }
   0xf   :  { %189 = vmatprep.subr.bf16.mxu0 %v270_v0  ;;  %205 = vmatprep.mubr.msk.bf16.mxu0 %vm271_vm0, %v270_v0  ;;  %v217_v3 = vld [vmem:[#allocation3 + $0x28] sm:$0xff]   ;;  %v218_v4 = vld [vmem:[#allocation3 + $0x20] sm:$0xff]   ;;  %v219_v5 = vld [vmem:[#allocation3 + $0x18] sm:$0xff]   ;;  %s272_s22 = smov [#allocation6]  }
  0x10   :  { %190 = vmatpush3.bf16.msra.mxu0 %v215_v1  ;;  %v220_v6 = vld [vmem:[#allocation3 + $0x10] sm:$0xff]   ;;  %v221_v7 = vld [vmem:[#allocation3 + $0x8] sm:$0xff]   ;;  %v222_v8 = vld [vmem:[#allocation3] sm:$0xff]   ;;  %s162_s23 = sshll.u32 %s272_s22, 4  ;;  %s163_s23 = int_to_ptr.vmem [resolvable:$true] %s162_s23 }
  0x11   :  { %191 = vmatprep.subr.bf16.mxu0 %v270_v0  ;;  %v36_v9 = vld [vmem:[%s305_s0] sm:$0xf]  ;;  %s243_s24 = scalar_lea.vmem %s163_s23, 128  ;;  %p248_p6 = scmp.lt.s32.totalorder %s163_s23, %s163_s23 }
  0x12   :  { %v179_v10 = vld [vmem:[%s307_s2] ss:$0 sm:$0xff]  ;;  %p244_p5 = scmp.ne.s32.totalorder %s163_s23, %s243_s24  ;;  %p249_p7 = scmp.lt.s32.totalorder %s243_s24, %s243_s24 }
  0x14   :  { %192 = vmatpush3.bf16.msra.mxu0 %v216_v2  ;;  %p250_p8 = por %p249_p7, %p248_p6 }
  0x15   :  { %193 = vmatprep.subr.bf16.mxu0 %v270_v0 }
  0x16   :  { %p251_p9 = pnand %p250_p8, %p244_p5 }
  0x18   :  { %194 = vmatpush3.bf16.msra.mxu0 %v217_v3 }
  0x19   :  { %195 = vmatprep.subr.bf16.mxu0 %v270_v0 }
  0x1c   :  { %196 = vmatpush3.bf16.msra.mxu0 %v218_v4 }
  0x1d   :  { %197 = vmatprep.subr.bf16.mxu0 %v270_v0 }
  0x20   :  { %198 = vmatpush3.bf16.msra.mxu0 %v219_v5 }
  0x21   :  { %199 = vmatprep.subr.bf16.mxu0 %v270_v0 }
  0x24   :  { %200 = vmatpush3.bf16.msra.mxu0 %v220_v6 }
  0x25   :  { %201 = vmatprep.subr.bf16.mxu0 %v270_v0 }
  0x28   :  { %202 = vmatpush3.bf16.msra.mxu0 %v221_v7 }
  0x29   :  { %203 = vmatprep.subr.bf16.mxu0 %v270_v0 }
  0x2c   :  { %204 = vmatpush3.bf16.msra.mxu0 %v222_v8 }
  0x2f   :  { %206 = vmatmul.mubr.bf16.vlgmr.msra.gmra.mxu0 %v36_v9 }
  0xef   :  { %v135_v11 = vpop.f32.mrf.mxu0 }
  0xf0   :  { %v154_v12 = vadd.f32 %v179_v10, %v135_v11 }
  0xf1   :  { %v207_v13 = vpop.f32.mrf.mxu0 }
  0xf2   :  { %155 = vst [vmem:[#allocation6] sm:$0xff] %v154_v12 }
  0xf3   :  { %v138_v14 = vpop.f32.mrf.mxu0 }
  0xf4   :  { %254 = shalt.err (!%p251_p9)
}
  0xf5   :  { %165 = dma.vmem_to_hbm [thread:$0]  %s163_s23, 128, %s308_s3, [#allocation5]   ;;  %v208_v15 = vpop.f32.mrf.mxu0 }
  0xf6   :  { %265 = dma.done.wait [#allocation5], 128  }
  0xf7   :  { %266 = vsyncadd [#allocation5], 4294967168 }
  0xf8   :  { %169 = vsyncpa [#allocation4], 1 }
  0xf9   :  { %170 = vsyncpa [#allocation5], 1 }

</bundles_post_ra>
